<compile_context>
chip_gen: v7x
topology: tpu7x:2x2x1
jax: 0.10.0
libtpu: 0.0.40
codegen_flags: <defaults>
</compile_context>

<pallas_src>
import functools

import jax
import jax.numpy as jnp
from jax.experimental import pallas as pl
from jax.experimental.pallas import tpu as pltpu

EPS = 1e-5
K = 3  # the module uses kernel_size=3, stride=1, padding=1 (SAME output size)


def _conv_bn_relu_kernel(xf_ref, wf_ref, mask_ref, gamma_ref, beta_ref,
                         o_ref, rhs_scr, y_scr, *,
                         wp, hwp, cin, cout, h, w_img, n_img):
    """One grid step = one image.

    xf_ref:    (1, Cin, L)      flattened zero-padded image, L=(H+4)*Wp
    wf_ref:    (Cout, 9*Cin)    tap-major flattened conv weights
    mask_ref:  (1, H*Wp)        1.0 on valid output columns, 0.0 on halo cols
    gamma_ref: (Cout, 1)        BN weight
    beta_ref:  (Cout, 1)        BN bias
    o_ref:     (N, Cout, H*W)   final lane-dense output (written at last step)
    rhs_scr:   (9*Cin, H*Wp)    VMEM scratch: stacked shifted taps (RHS)
    y_scr:     (N, Cout, H*Wp)  VMEM-resident wide conv outputs (f32)
    """
    i = pl.program_id(0)

    # ---- conv for image i: stack the 9 shifted taps, ONE MXU matmul -------
    for t in range(9):
        dy, dx = divmod(t, 3)
        start = (dy + 1) * wp + (dx - 1)               # static flat offset
        rhs_scr[pl.ds(t * cin, cin), :] = xf_ref[0, :, pl.ds(start, hwp)]

    # (Cout, 9*Cin) x (9*Cin, H*Wp) -> (Cout, H*Wp), f32 accumulate on MXU.
    y_scr[i] = jnp.dot(wf_ref[...], rhs_scr[...],
                       preferred_element_type=jnp.float32)

    # ---- last step: BN batch stats + folded affine + ReLU + halo drop -----
    @pl.when(i == pl.num_programs(0) - 1)
    def _finalize():
        ys = y_scr[...]                                # (N, Cout, H*Wp) f32
        msk = mask_ref[...]                            # (1, H*Wp)
        inv_m = 1.0 / float(n_img * h * w_img)

        # mean over valid columns, then a *centered* variance (two-pass).
        mean = jnp.sum(jnp.sum(ys * msk, axis=2, keepdims=True),
                       axis=0, keepdims=True) * inv_m          # (1, Cout, 1)
        cen = (ys - mean) * msk
        var = jnp.sum(jnp.sum(cen * cen, axis=2, keepdims=True),
                      axis=0, keepdims=True) * inv_m           # (1, Cout, 1)

        scale = gamma_ref[...].reshape(1, cout, 1) * jax.lax.rsqrt(var + EPS)
        shift = beta_ref[...].reshape(1, cout, 1) - mean * scale
        act = jnp.maximum(ys * scale + shift, 0.0)             # (N, Cout, H*Wp)

        # Drop the width halo: copy the W valid lanes of each image row into
        # the lane-dense (N, Cout, H*W) output slab.
        for r in range(h):
            o_ref[:, :, pl.ds(r * w_img, w_img)] = (
                act[:, :, r * wp + 1: r * wp + 1 + w_img])


def conv2d_pxp_forward(x_nchw, weight, bias, gamma, beta,
                       compute_dtype=jnp.float32):
    """conv2d(k=3,s=1,p=1) + BatchNorm2d(training stats) + ReLU."""
    del bias  # exactly cancelled by the training-mode BN mean subtraction
    n, cin, h, w_img = x_nchw.shape
    cout = weight.shape[0]

    # Padded row stride: >= W+2 (conv halo) and chosen so H*Wp % 128 == 0
    # (lane-dense conv rows; for H=16, W=16 -> Wp=24, H*Wp=384=3*128).
    wp = w_img + 2
    for cand in range(w_img + 2, w_img + 2 + 129):
        if (h * cand) % 128 == 0:
            wp = cand
            break
    hwp = h * wp
    l_flat = (h + 4) * wp          # +1 slack row top & bottom for shifted reads

    # ---- light-weight input prep (pad + contiguous reshape; no im2col) ----
    xp = jnp.pad(x_nchw.astype(compute_dtype),
                 ((0, 0), (0, 0), (2, 2), (1, wp - w_img - 1)))
    xf = xp.reshape(n, cin, l_flat)

    # weights flattened tap-major: column (3*dy+dx)*Cin + ci
    wf = jnp.transpose(weight.astype(compute_dtype), (0, 2, 3, 1)).reshape(
        cout, 9 * cin)

    # validity mask over wide columns: column u is real iff (u % Wp) in [1, W]
    u = jnp.arange(hwp, dtype=jnp.int32) % wp
    mask = ((u >= 1) & (u <= w_img)).astype(jnp.float32).reshape(1, hwp)

    gamma2 = gamma.astype(jnp.float32).reshape(cout, 1)
    beta2 = beta.astype(jnp.float32).reshape(cout, 1)

    # VMEM budget from actual buffer sizes (not a hardcoded 32 MiB).
    isz = jnp.finfo(compute_dtype).bits // 8
    vmem_bytes = (2 * cin * l_flat * isz            # xf block (double-buffered)
                  + 2 * cout * 9 * cin * isz        # weights
                  + 9 * cin * hwp * isz             # rhs scratch
                  + n * cout * hwp * 4              # y scratch (f32)
                  + 2 * n * cout * h * w_img * 4    # output block
                  + 2 * (hwp + 2 * cout) * 4)       # mask, gamma, beta
    vmem_limit = int(max(1 << 20, 4 * vmem_bytes))

    cost = pl.CostEstimate(
        flops=2 * n * cout * 9 * cin * hwp + 10 * n * cout * hwp,
        transcendentals=cout,
        bytes_accessed=isz * (n * cin * l_flat + cout * 9 * cin)
        + 4 * (hwp + 2 * cout + n * cout * h * w_img))

    out_flat = pl.pallas_call(
        functools.partial(_conv_bn_relu_kernel, wp=wp, hwp=hwp, cin=cin,
                          cout=cout, h=h, w_img=w_img, n_img=n),
        out_shape=jax.ShapeDtypeStruct((n, cout, h * w_img), jnp.float32),
        grid_spec=pltpu.PrefetchScalarGridSpec(
            num_scalar_prefetch=0,
            grid=(n,),
            in_specs=[
                pl.BlockSpec((1, cin, l_flat), lambda i: (i, 0, 0)),
                pl.BlockSpec((cout, 9 * cin), lambda i: (0, 0)),
                pl.BlockSpec((1, hwp), lambda i: (0, 0)),
                pl.BlockSpec((cout, 1), lambda i: (0, 0)),
                pl.BlockSpec((cout, 1), lambda i: (0, 0)),
            ],
            out_specs=pl.BlockSpec((n, cout, h * w_img), lambda i: (0, 0, 0)),
            scratch_shapes=[
                pltpu.VMEM((9 * cin, hwp), compute_dtype),   # RHS tap stack
                pltpu.VMEM((n, cout, hwp), jnp.float32),     # resident conv out
            ],
        ),
        # Stats accumulate across the batch axis and the output block is
        # resident across it, so this grid axis must run serially.
        compiler_params=pltpu.CompilerParams(
            dimension_semantics=("arbitrary",),
            vmem_limit_bytes=vmem_limit),
        cost_estimate=cost,
    )(xf, wf, mask, gamma2, beta2)

    # Free metadata reshape (output is already lane-dense NCHW data).
    return out_flat.reshape(n, cout, h, w_img)


def reference_forward(x_nchw, weight, bias, gamma, beta, pad=1):
    """Pure-JAX reference: conv2d + training-mode BN + ReLU."""
    y = jax.lax.conv_general_dilated(
        x_nchw.astype(jnp.float32), weight.astype(jnp.float32),
        window_strides=(1, 1), padding=[(pad, pad), (pad, pad)],
        dimension_numbers=("NCHW", "OIHW", "NCHW"))
    y = y + bias.reshape(1, -1, 1, 1)
    mean = jnp.mean(y, axis=(0, 2, 3), keepdims=True)
    var = jnp.mean((y - mean) ** 2, axis=(0, 2, 3), keepdims=True)
    y_hat = (y - mean) * jax.lax.rsqrt(var + EPS)
    out = gamma.reshape(1, -1, 1, 1) * y_hat + beta.reshape(1, -1, 1, 1)
    return jnp.maximum(out, 0.0)


if __name__ == "__main__":
    # Small shapes consistent with the module: in_ch=4, out_ch=8, k=3.
    N, CIN, COUT, H, W = 2, 4, 8, 16, 16

    key = jax.random.PRNGKey(0)
    kx, kw, kb = jax.random.split(key, 3)

    x = jax.random.normal(kx, (N, CIN, H, W), dtype=jnp.float32)

    # Deterministic PyTorch-Conv2d-like uniform fan-in init.
    fan_in = CIN * K * K
    bound = 1.0 / (fan_in ** 0.5)
    weight = jax.random.uniform(kw, (COUT, CIN, K, K), jnp.float32,
                                minval=-bound, maxval=bound)
    bias = jax.random.uniform(kb, (COUT,), jnp.float32,
                              minval=-bound, maxval=bound)
    gamma = jnp.ones((COUT,), jnp.float32)   # BatchNorm2d default weight
    beta = jnp.zeros((COUT,), jnp.float32)   # BatchNorm2d default bias

    out = jax.block_until_ready(conv2d_pxp_forward(x, weight, bias, gamma, beta))
    ref = jax.block_until_ready(reference_forward(x, weight, bias, gamma, beta))

    assert out.shape == (N, COUT, H, W), out.shape
    max_err = float(jnp.max(jnp.abs(out - ref)))
    assert jnp.allclose(out, ref, atol=1e-4, rtol=1e-4), max_err

    print("KERNEL_OK")
</pallas_src>

<mosaic_0001>
module attributes {stable_mosaic.version = 11 : i64} {
  func.func @_conv_bn_relu_kernel(%arg0: i32, %arg1: memref<1x4x480xf32, #tpu.memory_space<vmem>>, %arg2: memref<8x36xf32, #tpu.memory_space<vmem>>, %arg3: memref<1x384xf32, #tpu.memory_space<vmem>>, %arg4: memref<8x1xf32, #tpu.memory_space<vmem>>, %arg5: memref<8x1xf32, #tpu.memory_space<vmem>>, %arg6: memref<2x8x256xf32, #tpu.memory_space<vmem>>, %arg7: memref<36x384xf32, #tpu.memory_space<vmem>>, %arg8: memref<2x8x384xf32, #tpu.memory_space<vmem>>) attributes {dimension_semantics = [#tpu.dimension_semantics<arbitrary>], iteration_bounds = array<i64: 2>, scalar_prefetch = 0 : i64, scratch_operands = 2 : i64, tpu.core_type = #tpu.core_type<tc>, window_params = [{transform_indices = @transform_0, window_bounds = array<i64: 1, 4, 480>}, {pipeline_mode = #tpu.pipeline_mode<synchronous>, transform_indices = @transform_1, window_bounds = array<i64: 8, 36>}, {pipeline_mode = #tpu.pipeline_mode<synchronous>, transform_indices = @transform_2, window_bounds = array<i64: 1, 384>}, {pipeline_mode = #tpu.pipeline_mode<synchronous>, transform_indices = @transform_3, window_bounds = array<i64: 8, 1>}, {pipeline_mode = #tpu.pipeline_mode<synchronous>, transform_indices = @transform_4, window_bounds = array<i64: 8, 1>}, {pipeline_mode = #tpu.pipeline_mode<synchronous>, transform_indices = @transform_5, window_bounds = array<i64: 2, 8, 256>}]} {
    %c0 = arith.constant 0 : index
    %c0_0 = arith.constant 0 : index
    %c23 = arith.constant 23 : index
    %0 = vector.load %arg1[%c0, %c0_0, %c23] : memref<1x4x480xf32, #tpu.memory_space<vmem>>, vector<1x4x384xf32>
    %1 = vector.shape_cast %0 : vector<1x4x384xf32> to vector<4x384xf32>
    %c0_1 = arith.constant 0 : index
    %c0_2 = arith.constant 0 : index
    %2 = vector.load %arg7[%c0_1, %c0_2] : memref<36x384xf32, #tpu.memory_space<vmem>>, vector<4x384xf32>
    tpu.vector_store %arg7[%c0_1, %c0_2], %1 {strides = array<i32>} : memref<36x384xf32, #tpu.memory_space<vmem>>, vector<4x384xf32>,
    %c0_3 = arith.constant 0 : index
    %c0_4 = arith.constant 0 : index
    %c24 = arith.constant 24 : index
    %3 = vector.load %arg1[%c0_3, %c0_4, %c24] : memref<1x4x480xf32, #tpu.memory_space<vmem>>, vector<1x4x384xf32>
    %4 = vector.shape_cast %3 : vector<1x4x384xf32> to vector<4x384xf32>
    %c4 = arith.constant 4 : index
    %c0_5 = arith.constant 0 : index
    %5 = vector.load %arg7[%c4, %c0_5] : memref<36x384xf32, #tpu.memory_space<vmem>>, vector<4x384xf32>
    tpu.vector_store %arg7[%c4, %c0_5], %4 {strides = array<i32>} : memref<36x384xf32, #tpu.memory_space<vmem>>, vector<4x384xf32>,
    %c0_6 = arith.constant 0 : index
    %c0_7 = arith.constant 0 : index
    %c25 = arith.constant 25 : index
    %6 = vector.load %arg1[%c0_6, %c0_7, %c25] : memref<1x4x480xf32, #tpu.memory_space<vmem>>, vector<1x4x384xf32>
    %7 = vector.shape_cast %6 : vector<1x4x384xf32> to vector<4x384xf32>
    %c8 = arith.constant 8 : index
    %c0_8 = arith.constant 0 : index
    %8 = vector.load %arg7[%c8, %c0_8] : memref<36x384xf32, #tpu.memory_space<vmem>>, vector<4x384xf32>
    tpu.vector_store %arg7[%c8, %c0_8], %7 {strides = array<i32>} : memref<36x384xf32, #tpu.memory_space<vmem>>, vector<4x384xf32>,
    %c0_9 = arith.constant 0 : index
    %c0_10 = arith.constant 0 : index
    %c47 = arith.constant 47 : index
    %9 = vector.load %arg1[%c0_9, %c0_10, %c47] : memref<1x4x480xf32, #tpu.memory_space<vmem>>, vector<1x4x384xf32>
    %10 = vector.shape_cast %9 : vector<1x4x384xf32> to vector<4x384xf32>
    %c12 = arith.constant 12 : index
    %c0_11 = arith.constant 0 : index
    %11 = vector.load %arg7[%c12, %c0_11] : memref<36x384xf32, #tpu.memory_space<vmem>>, vector<4x384xf32>
    tpu.vector_store %arg7[%c12, %c0_11], %10 {strides = array<i32>} : memref<36x384xf32, #tpu.memory_space<vmem>>, vector<4x384xf32>,
    %c0_12 = arith.constant 0 : index
    %c0_13 = arith.constant 0 : index
    %c48 = arith.constant 48 : index
    %12 = vector.load %arg1[%c0_12, %c0_13, %c48] : memref<1x4x480xf32, #tpu.memory_space<vmem>>, vector<1x4x384xf32>
    %13 = vector.shape_cast %12 : vector<1x4x384xf32> to vector<4x384xf32>
    %c16 = arith.constant 16 : index
    %c0_14 = arith.constant 0 : index
    %14 = vector.load %arg7[%c16, %c0_14] : memref<36x384xf32, #tpu.memory_space<vmem>>, vector<4x384xf32>
    tpu.vector_store %arg7[%c16, %c0_14], %13 {strides = array<i32>} : memref<36x384xf32, #tpu.memory_space<vmem>>, vector<4x384xf32>,
    %c0_15 = arith.constant 0 : index
    %c0_16 = arith.constant 0 : index
    %c49 = arith.constant 49 : index
    %15 = vector.load %arg1[%c0_15, %c0_16, %c49] : memref<1x4x480xf32, #tpu.memory_space<vmem>>, vector<1x4x384xf32>
    %16 = vector.shape_cast %15 : vector<1x4x384xf32> to vector<4x384xf32>
    %c20 = arith.constant 20 : index
    %c0_17 = arith.constant 0 : index
    %17 = vector.load %arg7[%c20, %c0_17] : memref<36x384xf32, #tpu.memory_space<vmem>>, vector<4x384xf32>
    tpu.vector_store %arg7[%c20, %c0_17], %16 {strides = array<i32>} : memref<36x384xf32, #tpu.memory_space<vmem>>, vector<4x384xf32>,
    %c0_18 = arith.constant 0 : index
    %c0_19 = arith.constant 0 : index
    %c71 = arith.constant 71 : index
    %18 = vector.load %arg1[%c0_18, %c0_19, %c71] : memref<1x4x480xf32, #tpu.memory_space<vmem>>, vector<1x4x384xf32>
    %19 = vector.shape_cast %18 : vector<1x4x384xf32> to vector<4x384xf32>
    %c24_20 = arith.constant 24 : index
    %c0_21 = arith.constant 0 : index
    %20 = vector.load %arg7[%c24_20, %c0_21] : memref<36x384xf32, #tpu.memory_space<vmem>>, vector<4x384xf32>
    tpu.vector_store %arg7[%c24_20, %c0_21], %19 {strides = array<i32>} : memref<36x384xf32, #tpu.memory_space<vmem>>, vector<4x384xf32>,
    %c0_22 = arith.constant 0 : index
    %c0_23 = arith.constant 0 : index
    %c72 = arith.constant 72 : index
    %21 = vector.load %arg1[%c0_22, %c0_23, %c72] : memref<1x4x480xf32, #tpu.memory_space<vmem>>, vector<1x4x384xf32>
    %22 = vector.shape_cast %21 : vector<1x4x384xf32> to vector<4x384xf32>
    %c28 = arith.constant 28 : index
    %c0_24 = arith.constant 0 : index
    %23 = vector.load %arg7[%c28, %c0_24] : memref<36x384xf32, #tpu.memory_space<vmem>>, vector<4x384xf32>
    tpu.vector_store %arg7[%c28, %c0_24], %22 {strides = array<i32>} : memref<36x384xf32, #tpu.memory_space<vmem>>, vector<4x384xf32>,
    %c0_25 = arith.constant 0 : index
    %c0_26 = arith.constant 0 : index
    %c73 = arith.constant 73 : index
    %24 = vector.load %arg1[%c0_25, %c0_26, %c73] : memref<1x4x480xf32, #tpu.memory_space<vmem>>, vector<1x4x384xf32>
    %25 = vector.shape_cast %24 : vector<1x4x384xf32> to vector<4x384xf32>
    %c32 = arith.constant 32 : index
    %c0_27 = arith.constant 0 : index
    %26 = vector.load %arg7[%c32, %c0_27] : memref<36x384xf32, #tpu.memory_space<vmem>>, vector<4x384xf32>
    tpu.vector_store %arg7[%c32, %c0_27], %25 {strides = array<i32>} : memref<36x384xf32, #tpu.memory_space<vmem>>, vector<4x384xf32>,
    %c0_28 = arith.constant 0 : index
    %c0_29 = arith.constant 0 : index
    %27 = vector.load %arg2[%c0_28, %c0_29] : memref<8x36xf32, #tpu.memory_space<vmem>>, vector<8x36xf32>
    %c0_30 = arith.constant 0 : index
    %c0_31 = arith.constant 0 : index
    %28 = vector.load %arg7[%c0_30, %c0_31] : memref<36x384xf32, #tpu.memory_space<vmem>>, vector<36x384xf32>
    %cst = arith.constant dense<0.000000e+00> : vector<8x384xf32>
    %29 = tpu.matmul %27, %28, %cst {dimension_numbers = #tpu.dot_dimension_numbers<[1], [0], [0], [1], [0, 0, 1, 1], [], []>} : vector<8x36xf32>, vector<36x384xf32>, vector<8x384xf32> -> vector<8x384xf32>
    %30 = arith.index_cast %arg0 : i32 to index
    %c0_32 = arith.constant 0 : index
    %c0_33 = arith.constant 0 : index
    %31 = vector.load %arg8[%30, %c0_32, %c0_33] : memref<2x8x384xf32, #tpu.memory_space<vmem>>, vector<1x8x384xf32>
    %32 = vector.shape_cast %31 : vector<1x8x384xf32> to vector<8x384xf32>
    %33 = vector.shape_cast %29 : vector<8x384xf32> to vector<1x8x384xf32>
    tpu.vector_store %arg8[%30, %c0_32, %c0_33], %33 {strides = array<i32>} : memref<2x8x384xf32, #tpu.memory_space<vmem>>, vector<1x8x384xf32>,
    %c1_i32 = arith.constant 1 : i32
    %34 = arith.cmpi eq, %arg0, %c1_i32 : i32
    %35 = arith.extui %34 : i1 to i32
    %c0_i32 = arith.constant 0 : i32
    %36 = arith.cmpi ne, %35, %c0_i32 : i32
    scf.if %36 {
      %c0_34 = arith.constant 0 : index
      %c0_35 = arith.constant 0 : index
      %c0_36 = arith.constant 0 : index
      %37 = vector.load %arg8[%c0_34, %c0_35, %c0_36] : memref<2x8x384xf32, #tpu.memory_space<vmem>>, vector<2x8x384xf32>
      %c0_37 = arith.constant 0 : index
      %c0_38 = arith.constant 0 : index
      %38 = vector.load %arg3[%c0_37, %c0_38] : memref<1x384xf32, #tpu.memory_space<vmem>>, vector<1x384xf32>
      %39 = vector.shape_cast %38 : vector<1x384xf32> to vector<1x1x384xf32>
      %40 = vector.broadcast %39 : vector<1x1x384xf32> to vector<2x8x384xf32>
      %41 = arith.mulf %37, %40 : vector<2x8x384xf32>
      %cst_39 = arith.constant dense<0.000000e+00> : vector<2x8xf32>
      %42 = vector.multi_reduction <add>, %41, %cst_39 [2] : vector<2x8x384xf32> to vector<2x8xf32>
      %43 = vector.shape_cast %42 : vector<2x8xf32> to vector<2x8x1xf32>
      %cst_40 = arith.constant dense<0.000000e+00> : vector<8x1xf32>
      %44 = vector.multi_reduction <add>, %43, %cst_40 [0] : vector<2x8x1xf32> to vector<8x1xf32>
      %45 = vector.shape_cast %44 : vector<8x1xf32> to vector<1x8x1xf32>
      %cst_41 = arith.constant 0.001953125 : f32
      %46 = vector.broadcast %cst_41 : f32 to vector<1x8x1xf32>
      %47 = arith.mulf %45, %46 : vector<1x8x1xf32>
      %48 = vector.broadcast %47 : vector<1x8x1xf32> to vector<2x8x384xf32>
      %49 = arith.subf %37, %48 : vector<2x8x384xf32>
      %50 = vector.shape_cast %38 : vector<1x384xf32> to vector<1x1x384xf32>
      %51 = vector.broadcast %50 : vector<1x1x384xf32> to vector<2x8x384xf32>
      %52 = arith.mulf %49, %51 : vector<2x8x384xf32>
      %53 = arith.mulf %52, %52 : vector<2x8x384xf32>
      %cst_42 = arith.constant dense<0.000000e+00> : vector<2x8xf32>
      %54 = vector.multi_reduction <add>, %53, %cst_42 [2] : vector<2x8x384xf32> to vector<2x8xf32>
      %55 = vector.shape_cast %54 : vector<2x8xf32> to vector<2x8x1xf32>
      %cst_43 = arith.constant dense<0.000000e+00> : vector<8x1xf32>
      %56 = vector.multi_reduction <add>, %55, %cst_43 [0] : vector<2x8x1xf32> to vector<8x1xf32>
      %57 = vector.shape_cast %56 : vector<8x1xf32> to vector<1x8x1xf32>
      %cst_44 = arith.constant 0.001953125 : f32
      %58 = vector.broadcast %cst_44 : f32 to vector<1x8x1xf32>
      %59 = arith.mulf %57, %58 : vector<1x8x1xf32>
      %c0_45 = arith.constant 0 : index
      %c0_46 = arith.constant 0 : index
      %60 = vector.load %arg4[%c0_45, %c0_46] : memref<8x1xf32, #tpu.memory_space<vmem>>, vector<8x1xf32>
      %61 = vector.shape_cast %60 : vector<8x1xf32> to vector<1x8x1xf32>
      %cst_47 = arith.constant 9.99999974E-6 : f32
      %62 = vector.broadcast %cst_47 : f32 to vector<1x8x1xf32>
      %63 = arith.addf %59, %62 : vector<1x8x1xf32>
      %64 = math.rsqrt %63 : vector<1x8x1xf32>
      %65 = arith.mulf %61, %64 : vector<1x8x1xf32>
      %c0_48 = arith.constant 0 : index
      %c0_49 = arith.constant 0 : index
      %66 = vector.load %arg5[%c0_48, %c0_49] : memref<8x1xf32, #tpu.memory_space<vmem>>, vector<8x1xf32>
      %67 = vector.shape_cast %66 : vector<8x1xf32> to vector<1x8x1xf32>
      %68 = arith.mulf %47, %65 : vector<1x8x1xf32>
      %69 = arith.subf %67, %68 : vector<1x8x1xf32>
      %70 = vector.broadcast %65 : vector<1x8x1xf32> to vector<2x8x384xf32>
      %71 = arith.mulf %37, %70 : vector<2x8x384xf32>
      %72 = vector.broadcast %69 : vector<1x8x1xf32> to vector<2x8x384xf32>
      %73 = arith.addf %71, %72 : vector<2x8x384xf32>
      %cst_50 = arith.constant 0.000000e+00 : f32
      %74 = vector.broadcast %cst_50 : f32 to vector<2x8x384xf32>
      %75 = arith.maximumf %73, %74 : vector<2x8x384xf32>
      %76 = vector.extract_strided_slice %75 {offsets = [0, 0, 1], sizes = [2, 8, 16], strides = [1, 1, 1]} : vector<2x8x384xf32> to vector<2x8x16xf32>
      %c0_51 = arith.constant 0 : index
      %c0_52 = arith.constant 0 : index
      %c0_53 = arith.constant 0 : index
      %77 = vector.load %arg6[%c0_51, %c0_52, %c0_53] : memref<2x8x256xf32, #tpu.memory_space<vmem>>, vector<2x8x16xf32>
      tpu.vector_store %arg6[%c0_51, %c0_52, %c0_53], %76 {strides = array<i32>} : memref<2x8x256xf32, #tpu.memory_space<vmem>>, vector<2x8x16xf32>,
      %78 = vector.extract_strided_slice %75 {offsets = [0, 0, 25], sizes = [2, 8, 16], strides = [1, 1, 1]} : vector<2x8x384xf32> to vector<2x8x16xf32>
      %c0_54 = arith.constant 0 : index
      %c0_55 = arith.constant 0 : index
      %c16_56 = arith.constant 16 : index
      %79 = vector.load %arg6[%c0_54, %c0_55, %c16_56] : memref<2x8x256xf32, #tpu.memory_space<vmem>>, vector<2x8x16xf32>
      tpu.vector_store %arg6[%c0_54, %c0_55, %c16_56], %78 {strides = array<i32>} : memref<2x8x256xf32, #tpu.memory_space<vmem>>, vector<2x8x16xf32>,
      %80 = vector.extract_strided_slice %75 {offsets = [0, 0, 49], sizes = [2, 8, 16], strides = [1, 1, 1]} : vector<2x8x384xf32> to vector<2x8x16xf32>
      %c0_57 = arith.constant 0 : index
      %c0_58 = arith.constant 0 : index
      %c32_59 = arith.constant 32 : index
      %81 = vector.load %arg6[%c0_57, %c0_58, %c32_59] : memref<2x8x256xf32, #tpu.memory_space<vmem>>, vector<2x8x16xf32>
      tpu.vector_store %arg6[%c0_57, %c0_58, %c32_59], %80 {strides = array<i32>} : memref<2x8x256xf32, #tpu.memory_space<vmem>>, vector<2x8x16xf32>,
      %82 = vector.extract_strided_slice %75 {offsets = [0, 0, 73], sizes = [2, 8, 16], strides = [1, 1, 1]} : vector<2x8x384xf32> to vector<2x8x16xf32>
      %c0_60 = arith.constant 0 : index
      %c0_61 = arith.constant 0 : index
      %c48_62 = arith.constant 48 : index
      %83 = vector.load %arg6[%c0_60, %c0_61, %c48_62] : memref<2x8x256xf32, #tpu.memory_space<vmem>>, vector<2x8x16xf32>
      tpu.vector_store %arg6[%c0_60, %c0_61, %c48_62], %82 {strides = array<i32>} : memref<2x8x256xf32, #tpu.memory_space<vmem>>, vector<2x8x16xf32>,
      %84 = vector.extract_strided_slice %75 {offsets = [0, 0, 97], sizes = [2, 8, 16], strides = [1, 1, 1]} : vector<2x8x384xf32> to vector<2x8x16xf32>
      %c0_63 = arith.constant 0 : index
      %c0_64 = arith.constant 0 : index
      %c64 = arith.constant 64 : index
      %85 = vector.load %arg6[%c0_63, %c0_64, %c64] : memref<2x8x256xf32, #tpu.memory_space<vmem>>, vector<2x8x16xf32>
      tpu.vector_store %arg6[%c0_63, %c0_64, %c64], %84 {strides = array<i32>} : memref<2x8x256xf32, #tpu.memory_space<vmem>>, vector<2x8x16xf32>,
      %86 = vector.extract_strided_slice %75 {offsets = [0, 0, 121], sizes = [2, 8, 16], strides = [1, 1, 1]} : vector<2x8x384xf32> to vector<2x8x16xf32>
      %c0_65 = arith.constant 0 : index
      %c0_66 = arith.constant 0 : index
      %c80 = arith.constant 80 : index
      %87 = vector.load %arg6[%c0_65, %c0_66, %c80] : memref<2x8x256xf32, #tpu.memory_space<vmem>>, vector<2x8x16xf32>
      tpu.vector_store %arg6[%c0_65, %c0_66, %c80], %86 {strides = array<i32>} : memref<2x8x256xf32, #tpu.memory_space<vmem>>, vector<2x8x16xf32>,
      %88 = vector.extract_strided_slice %75 {offsets = [0, 0, 145], sizes = [2, 8, 16], strides = [1, 1, 1]} : vector<2x8x384xf32> to vector<2x8x16xf32>
      %c0_67 = arith.constant 0 : index
      %c0_68 = arith.constant 0 : index
      %c96 = arith.constant 96 : index
      %89 = vector.load %arg6[%c0_67, %c0_68, %c96] : memref<2x8x256xf32, #tpu.memory_space<vmem>>, vector<2x8x16xf32>
      tpu.vector_store %arg6[%c0_67, %c0_68, %c96], %88 {strides = array<i32>} : memref<2x8x256xf32, #tpu.memory_space<vmem>>, vector<2x8x16xf32>,
      %90 = vector.extract_strided_slice %75 {offsets = [0, 0, 169], sizes = [2, 8, 16], strides = [1, 1, 1]} : vector<2x8x384xf32> to vector<2x8x16xf32>
      %c0_69 = arith.constant 0 : index
      %c0_70 = arith.constant 0 : index
      %c112 = arith.constant 112 : index
      %91 = vector.load %arg6[%c0_69, %c0_70, %c112] : memref<2x8x256xf32, #tpu.memory_space<vmem>>, vector<2x8x16xf32>
      tpu.vector_store %arg6[%c0_69, %c0_70, %c112], %90 {strides = array<i32>} : memref<2x8x256xf32, #tpu.memory_space<vmem>>, vector<2x8x16xf32>,
      %92 = vector.extract_strided_slice %75 {offsets = [0, 0, 193], sizes = [2, 8, 16], strides = [1, 1, 1]} : vector<2x8x384xf32> to vector<2x8x16xf32>
      %c0_71 = arith.constant 0 : index
      %c0_72 = arith.constant 0 : index
      %c128 = arith.constant 128 : index
      %93 = vector.load %arg6[%c0_71, %c0_72, %c128] : memref<2x8x256xf32, #tpu.memory_space<vmem>>, vector<2x8x16xf32>
      tpu.vector_store %arg6[%c0_71, %c0_72, %c128], %92 {strides = array<i32>} : memref<2x8x256xf32, #tpu.memory_space<vmem>>, vector<2x8x16xf32>,
      %94 = vector.extract_strided_slice %75 {offsets = [0, 0, 217], sizes = [2, 8, 16], strides = [1, 1, 1]} : vector<2x8x384xf32> to vector<2x8x16xf32>
      %c0_73 = arith.constant 0 : index
      %c0_74 = arith.constant 0 : index
      %c144 = arith.constant 144 : index
      %95 = vector.load %arg6[%c0_73, %c0_74, %c144] : memref<2x8x256xf32, #tpu.memory_space<vmem>>, vector<2x8x16xf32>
      tpu.vector_store %arg6[%c0_73, %c0_74, %c144], %94 {strides = array<i32>} : memref<2x8x256xf32, #tpu.memory_space<vmem>>, vector<2x8x16xf32>,
      %96 = vector.extract_strided_slice %75 {offsets = [0, 0, 241], sizes = [2, 8, 16], strides = [1, 1, 1]} : vector<2x8x384xf32> to vector<2x8x16xf32>
      %c0_75 = arith.constant 0 : index
      %c0_76 = arith.constant 0 : index
      %c160 = arith.constant 160 : index
      %97 = vector.load %arg6[%c0_75, %c0_76, %c160] : memref<2x8x256xf32, #tpu.memory_space<vmem>>, vector<2x8x16xf32>
      tpu.vector_store %arg6[%c0_75, %c0_76, %c160], %96 {strides = array<i32>} : memref<2x8x256xf32, #tpu.memory_space<vmem>>, vector<2x8x16xf32>,
      %98 = vector.extract_strided_slice %75 {offsets = [0, 0, 265], sizes = [2, 8, 16], strides = [1, 1, 1]} : vector<2x8x384xf32> to vector<2x8x16xf32>
      %c0_77 = arith.constant 0 : index
      %c0_78 = arith.constant 0 : index
      %c176 = arith.constant 176 : index
      %99 = vector.load %arg6[%c0_77, %c0_78, %c176] : memref<2x8x256xf32, #tpu.memory_space<vmem>>, vector<2x8x16xf32>
      tpu.vector_store %arg6[%c0_77, %c0_78, %c176], %98 {strides = array<i32>} : memref<2x8x256xf32, #tpu.memory_space<vmem>>, vector<2x8x16xf32>,
      %100 = vector.extract_strided_slice %75 {offsets = [0, 0, 289], sizes = [2, 8, 16], strides = [1, 1, 1]} : vector<2x8x384xf32> to vector<2x8x16xf32>
      %c0_79 = arith.constant 0 : index
      %c0_80 = arith.constant 0 : index
      %c192 = arith.constant 192 : index
      %101 = vector.load %arg6[%c0_79, %c0_80, %c192] : memref<2x8x256xf32, #tpu.memory_space<vmem>>, vector<2x8x16xf32>
      tpu.vector_store %arg6[%c0_79, %c0_80, %c192], %100 {strides = array<i32>} : memref<2x8x256xf32, #tpu.memory_space<vmem>>, vector<2x8x16xf32>,
      %102 = vector.extract_strided_slice %75 {offsets = [0, 0, 313], sizes = [2, 8, 16], strides = [1, 1, 1]} : vector<2x8x384xf32> to vector<2x8x16xf32>
      %c0_81 = arith.constant 0 : index
      %c0_82 = arith.constant 0 : index
      %c208 = arith.constant 208 : index
      %103 = vector.load %arg6[%c0_81, %c0_82, %c208] : memref<2x8x256xf32, #tpu.memory_space<vmem>>, vector<2x8x16xf32>
      tpu.vector_store %arg6[%c0_81, %c0_82, %c208], %102 {strides = array<i32>} : memref<2x8x256xf32, #tpu.memory_space<vmem>>, vector<2x8x16xf32>,
      %104 = vector.extract_strided_slice %75 {offsets = [0, 0, 337], sizes = [2, 8, 16], strides = [1, 1, 1]} : vector<2x8x384xf32> to vector<2x8x16xf32>
      %c0_83 = arith.constant 0 : index
      %c0_84 = arith.constant 0 : index
      %c224 = arith.constant 224 : index
      %105 = vector.load %arg6[%c0_83, %c0_84, %c224] : memref<2x8x256xf32, #tpu.memory_space<vmem>>, vector<2x8x16xf32>
      tpu.vector_store %arg6[%c0_83, %c0_84, %c224], %104 {strides = array<i32>} : memref<2x8x256xf32, #tpu.memory_space<vmem>>, vector<2x8x16xf32>,
      %106 = vector.extract_strided_slice %75 {offsets = [0, 0, 361], sizes = [2, 8, 16], strides = [1, 1, 1]} : vector<2x8x384xf32> to vector<2x8x16xf32>
      %c0_85 = arith.constant 0 : index
      %c0_86 = arith.constant 0 : index
      %c240 = arith.constant 240 : index
      %107 = vector.load %arg6[%c0_85, %c0_86, %c240] : memref<2x8x256xf32, #tpu.memory_space<vmem>>, vector<2x8x16xf32>
      tpu.vector_store %arg6[%c0_85, %c0_86, %c240], %106 {strides = array<i32>} : memref<2x8x256xf32, #tpu.memory_space<vmem>>, vector<2x8x16xf32>,
    } else {
    }
    return
  }
  func.func @transform_0(%arg0: i32) -> (i32, i32, i32) {
    %c0_i32 = arith.constant 0 : i32
    %c0_i32_0 = arith.constant 0 : i32
    %c0_i32_1 = arith.constant 0 : i32
    return %arg0, %c0_i32, %c0_i32_0 : i32, i32, i32
  }
  func.func @transform_1(%arg0: i32) -> (i32, i32) {
    %c0_i32 = arith.constant 0 : i32
    %c0_i32_0 = arith.constant 0 : i32
    %c0_i32_1 = arith.constant 0 : i32
    return %c0_i32, %c0_i32_0 : i32, i32
  }
  func.func @transform_2(%arg0: i32) -> (i32, i32) {
    %c0_i32 = arith.constant 0 : i32
    %c0_i32_0 = arith.constant 0 : i32
    %c0_i32_1 = arith.constant 0 : i32
    return %c0_i32, %c0_i32_0 : i32, i32
  }
  func.func @transform_3(%arg0: i32) -> (i32, i32) {
    %c0_i32 = arith.constant 0 : i32
    %c0_i32_0 = arith.constant 0 : i32
    %c0_i32_1 = arith.constant 0 : i32
    return %c0_i32, %c0_i32_0 : i32, i32
  }
  func.func @transform_4(%arg0: i32) -> (i32, i32) {
    %c0_i32 = arith.constant 0 : i32
    %c0_i32_0 = arith.constant 0 : i32
    %c0_i32_1 = arith.constant 0 : i32
    return %c0_i32, %c0_i32_0 : i32, i32
  }
  func.func @transform_5(%arg0: i32) -> (i32, i32, i32) {
    %c0_i32 = arith.constant 0 : i32
    %c0_i32_0 = arith.constant 0 : i32
    %c0_i32_1 = arith.constant 0 : i32
    %c0_i32_2 = arith.constant 0 : i32
    return %c0_i32, %c0_i32_0, %c0_i32_1 : i32, i32, i32
  }
}

</mosaic_0001>

<bundles_post_ra>
// kernel: tpu_custom_call.1
= control target key start
LH: loop header
LB: loop body
LE: loop exit
PB: predicated region body
PF: predicated region fallthrough
CT: control target
= control target key end

     0   :  { %10 = vsyncpa [#allocation5], 0  ;;  %s1468_s0 = inlined_call_operand.hbm [shape: f32[2,4,480], index: 0, kind: input, shape index: {}]   ;;  %s1469_s1 = inlined_call_operand.vmem [shape: f32[8,36], index: 1, kind: input, shape index: {}]   ;;  %s1470_s2 = inlined_call_operand.vmem [shape: f32[1,384], index: 2, kind: input, shape index: {}]   ;;  %s1471_s3 = inlined_call_operand.vmem [shape: f32[8,1], index: 3, kind: input, shape index: {}]   ;;  %s1472_s4 = inlined_call_operand.vmem [shape: f32[8,1], index: 4, kind: input, shape index: {}]   ;;  %s1473_s5 = inlined_call_operand.hbm [shape: f32[2,8,256], index: 5, kind: output, shape index: {}]  }
   0x1   :  { %12 = vsyncpa [#allocation5 + $0x1], 0 }
   0x2   :  { %13 = vsyncpa [#allocation6], 0  ;;  %s1243_s18 = smov 0   ;;  %s1245_s19 = smov 0  }
   0x3   :  { %s1247_s20 = smov 0   ;;  %s1249_s21 = smov 0  }
   0x4 LB: > { %s1262_s22 = sadd.s32 4294967295, %s1178_s21   ;;  %s1265_s23 = sadd.s32 1, %s1178_s21   ;;  %s1178_s21 = sphi %s1249_s21, %s1481_s21   ;;  %s1174_s20 = sphi %s1247_s20, %s1480_s20   ;;  %s1170_s19 = sphi %s1245_s19, %s1479_s19   ;;  %s1166_s18 = sphi %s1243_s18, %s1478_s18  }
   0x5   : > { %s23_s24 = ssub.s32 %s1178_s21, %s1265_s23  ;;  %s26_s25 = sadd.s32 1, %s1174_s20 }
   0x6   : > { %p24_p0 = scmp.eq.s32.totalorder %s23_s24, 0  ;;  %p33_p1 = scmp.ne.s32.totalorder %s1174_s20, %s1170_s19 }
   0x7   : > { %p34_p2 = scmp.eq.s32.totalorder %s1178_s21, 0  ;;  %p39_p3 = scmp.ne.s32.totalorder %s1170_s19, %s1166_s18 }
   0x8   : > { %s1275_s26 = scalar_select %p24_p0, %s1174_s20, %s26_s25  }
   0x9   : > { %p35_p4 = por %p34_p2, %p33_p1  ;;  %p40_p5 = scmp.eq.s32.totalorder %s1262_s22, 0 }
   0xa   : > { %p1009_p6 = scmp.lt.s32.totalorder %s1178_s21, 2  ;;  %s180_s28 = sand.u32 1, %s1174_s20  }
   0xb   : > { %p1279_p7 = por %p40_p5, %p39_p3  ;;  %s948_s29 = sshll.u32 %s180_s28, 4 }
   0xc   : > { %s964_s30 = sshll.u32 %s1178_s21, 8  ;;  %s184_s9 = scalar_lea.vmem [#allocation4], %s948_s29 }
   0xd   : > { %s1288_s8 = scalar_lea.hbm %s1468_s0, %s964_s30  ;;  %s192_s10 = sshll.u32 %s184_s9, 4  ;;  %s1290_s10 = int_to_ptr.vmem [resolvable:$true] %s192_s10 }
   0xe   : > { %p1292_p8 = pnand %p1009_p6, %p35_p4  ;;  %s181_s12 = scalar_lea.sflag [#allocation5], %s180_s28 }
   0xf   : > { %s1084_s13 = scalar_lea.hbm %s1288_s8, 256  ;;  %s1089_s16 = scalar_lea.hbm %s1468_s0, 512 }
  0x10   : > { %p1085_p11 = scmp.ne.s32.totalorder %s1288_s8, %s1084_s13  ;;  %p1086_p12 = pneg %p1292_p8 }
  0x11   : > { %p1090_p1 = scmp.lt.u32.totalorder %s1288_s8, %s1468_s0  ;;  %p1091_p2 = scmp.lt.u32.totalorder %s1089_s16, %s1084_s13 }
  0x12   : > { %p1087_p13 = pnand %p1086_p12, %p1085_p11  ;;  %p1093_p4 = scmp.lt.u32.totalorder %s1084_s13, %s1288_s8 }
  0x13   : > { %p1092_p3 = por %p1091_p2, %p1090_p1 }
  0x14   : > { %p1088_p0 = pneg %p1087_p13 }
  0x15   : > { %p1094_p5 = por %p1093_p4, %p1092_p3 }
  0x17   : > { %p1095_p6 = pnand %p1094_p5, %p1088_p0 }
  0x19   : > { %1098 = shalt.err (!%p1095_p6)
}
  0x1a   : > { %s1099_s24 = scalar_lea.vmem %s1290_s10, 256  ;;  %s1180_s25 = smov [#allocation4]  }
  0x1b   : > { %p1100_p11 = scmp.ne.s32.totalorder %s1290_s10, %s1099_s24  ;;  %s1104_s28 = sshll.u32 %s1180_s25, 4  ;;  %s1105_s28 = int_to_ptr.vmem [resolvable:$false] %s1104_s28 }
  0x1c   : > { %s1106_s29 = scalar_lea.vmem %s1105_s28, 512  ;;  %p1107_p10 = scmp.lt.s32.totalorder %s1290_s10, %s1105_s28 }
  0x1d   : > { %p1102_p13 = pnand %p1100_p11, %p1086_p12  ;;  %p1108_p1 = scmp.lt.s32.totalorder %s1106_s29, %s1099_s24 }
  0x1f   : > { %p1103_p9 = pneg %p1102_p13  ;;  %p1109_p2 = por %p1108_p1, %p1107_p10 }
  0x21   : > { %p1110_p3 = pnand %p1109_p2, %p1103_p9 }
  0x23   : > { %1113 = shalt.err (!%p1110_p3)
}
  0x24   : > { %1008 = dma.hbm_to_vmem [thread:$0]  (!%p1292_p8), %s1288_s8, 256, %s1290_s10, %s181_s12  }
  0x25   : > { %p1476_p0 = scmp.lt.s32.totalorder %s1178_s21, 3  ;;  %p1477_p4 = scmp.ge.s32.totalorder %s1178_s21, 1 }
  0x27   : > { %p198_p12 = pnand %p1477_p4, %p1476_p0 }
  0x28   : > { %s203_s30 = sand.u32 (!%p198_p12), 1, %s1170_s19  }
  0x29   : > { %201 = sbr.rel (%p198_p12) target bundleno = 1153 (0x481), region = 40  ;;  %s952_s6 = sshll.u32 (!%p198_p12), %s203_s30, 4 }
  0x2a   : > { %s204_s7 = scalar_lea.sflag (!%p198_p12), [#allocation5], %s203_s30  ;;  %s207_s9 = scalar_lea.vmem (!%p198_p12), [#allocation4], %s952_s6 }
  0x30   : > { %1157 = dma.done.wait (%p1279_p7), %s204_s7, 256  }
  0x31   : > { %1159 = vsyncadd (%p1279_p7), %s204_s7, 4294967040  ;;  %v253_v0 = vld [vmem:[%s207_s9] sm:$0xff]  ;;  %v230_v1 = vld [vmem:[%s207_s9 + $0x8] sm:$0xff]  ;;  %s1181_s11 = smov 104   ;;  %s1182_s8 = smov 105   ;;  %v1185_v6 = vmov 0.0|0.0  }
  0x32   : > { %261 = vrot.lane.b32.xlu1 %v253_v0, %s1181_s11  ;;  %239 = vrot.lane.b32.xlu0 %v230_v1, %s1182_s8  ;;  %v233_v2 = vcombine.high %v253_v0, %v253_v0  ;;  %s1183_s21 = smov 103   ;;  %v258_v3 = vcombine.low %v230_v1, %v230_v1  ;;  %v257_v4 = vcombine.low %v253_v0, %v253_v0  ;;  %s1184_s10 = smov 81   ;;  %v1190_v7 = vmov 0.0  }
  0x33   : > { %v234_v5 = vcombine.high %v230_v1, %v230_v1  ;;  %993 = vmatprep.subr.bf16.mxu1 %v1185_v6  ;;  %s1186_s27 = smov 80   ;;  %s1187_s12 = smov 79   ;;  %539 = vmatprep.mubr.f32.mxu0 %v1190_v7  ;;  %vm1192_vm0 = vmmov 0   ;;  %vm243_vm1 = vcmask 859136   ;;  %vm267_vm2 = vcmask 850944  }
  0x34   : > { %s1188_s13 = smov 57   ;;  %s1189_s14 = smov 56   ;;  %982 = vmatprep.mubr.msk.f32.mxu1 %vm1192_vm0, %v1190_v7  ;;  %vm291_vm3 = vcmask 842752   ;;  %vm315_vm4 = vcmask 662528   ;;  %vm339_vm5 = vcmask 654336   ;;  %vm363_vm6 = vcmask 646144  }
  0x35   : > { %s1191_s15 = smov 55   ;;  %vm387_vm7 = vcmask 465920   ;;  %vm411_vm8 = vcmask 457728   ;;  %vm435_vm9 = vcmask 449536   ;;  %vm465_vm10 = vcmask 1043456   ;;  %s965_s18 = smul.u32 24, %s1262_s22 }
  0x36   : > { %287 = vrot.lane.b32.xlu1 %v230_v1, %s1183_s21  ;;  %237 = vrot.lane.b32.xlu0 %v233_v2, %s1182_s8  ;;  %vm461_vm11 = vcmask 293888   ;;  %p959_p7 = scmp.ne.s32.totalorder %s1262_s22, 1 }
  0x37   : > { %s618_s24 = scalar_lea.vmem [#allocation3], %s965_s18  ;;  %s1194_s9 = smov (!%p959_p7), 127   ;;  %vm736_vm12 = vcmask (!%p959_p7), 130048   ;;  %vm745_vm13 = vcmask (!%p959_p7), 261248   ;;  %vm754_vm14 = vcmask (!%p959_p7), 392448   ;;  %vm763_vm15 = vcmask (!%p959_p7), 523648  }
  0x38   : > { %s1204_s16 = smov (!%p959_p7), 31   ;;  %s1205_s17 = smov (!%p959_p7), 23   ;;  %vm772_vm0 = vcmask (!%p959_p7), 654848  }
  0x39   : > { %s1206_s18 = smov (!%p959_p7), 79   ;;  %s1208_s25 = smov (!%p959_p7), 71  }
  0x3a   : > { %263 = vrot.lane.b32.xlu1 %v258_v3, %s1181_s11  ;;  %285 = vrot.lane.b32.xlu0 %v233_v2, %s1183_s21  ;;  %s1209_s28 = smov (!%p959_p7), 7  }
  0x3e   : > { %311 = vrot.lane.b32.xlu1 %v258_v3, %s1184_s10  ;;  %309 = vrot.lane.b32.xlu0 %v253_v0, %s1184_s10 }
  0x42   : > { %259 = vrot.lane.b32.xlu1 %v257_v4, %s1181_s11  ;;  %235 = vrot.lane.b32.xlu0 %v253_v0, %s1182_s8 }
  0x46   : > { %307 = vrot.lane.b32.xlu1 %v257_v4, %s1184_s10  ;;  %283 = vrot.lane.b32.xlu0 %v253_v0, %s1183_s21 }
  0x4a   : > { %265 = vrot.lane.b32.xlu1 %v230_v1, %s1181_s11  ;;  %241 = vrot.lane.b32.xlu0 %v234_v5, %s1182_s8  ;;  %s1195_s11 = smov (!%p959_p7), 55   ;;  %s1196_s8 = smov (!%p959_p7), 47  }
  0x4e   : > { %313 = vrot.lane.b32.xlu1 %v230_v1, %s1184_s10  ;;  %289 = vrot.lane.b32.xlu0 %v234_v5, %s1183_s21  ;;  %s1197_s21 = smov (!%p959_p7), 119   ;;  %s1198_s10 = smov (!%p959_p7), 111  }
  0x52   : > { %335 = vrot.lane.b32.xlu1 %v230_v1, %s1186_s27  ;;  %333 = vrot.lane.b32.xlu0 %v233_v2, %s1186_s27 }
  0x56   : > { %359 = vrot.lane.b32.xlu1 %v258_v3, %s1187_s12  ;;  %357 = vrot.lane.b32.xlu0 %v253_v0, %s1187_s12 }
  0x5a   : > { %383 = vrot.lane.b32.xlu1 %v230_v1, %s1188_s13  ;;  %381 = vrot.lane.b32.xlu0 %v233_v2, %s1188_s13 }
  0x5e   : > { %407 = vrot.lane.b32.xlu1 %v258_v3, %s1189_s14  ;;  %405 = vrot.lane.b32.xlu0 %v253_v0, %s1189_s14 }
  0x62   : > { %355 = vrot.lane.b32.xlu1 %v257_v4, %s1187_s12  ;;  %331 = vrot.lane.b32.xlu0 %v253_v0, %s1186_s27 }
  0x66   : > { %403 = vrot.lane.b32.xlu1 %v257_v4, %s1189_s14  ;;  %379 = vrot.lane.b32.xlu0 %v253_v0, %s1188_s13 }
  0x6a   : > { %361 = vrot.lane.b32.xlu1 %v230_v1, %s1187_s12  ;;  %337 = vrot.lane.b32.xlu0 %v234_v5, %s1186_s27  ;;  %s1199_s27 = smov (!%p959_p7), 63   ;;  %s1200_s12 = smov (!%p959_p7), 103  }
  0x6e   : > { %409 = vrot.lane.b32.xlu1 %v230_v1, %s1189_s14  ;;  %385 = vrot.lane.b32.xlu0 %v234_v5, %s1188_s13  ;;  %s1201_s13 = smov (!%p959_p7), 39   ;;  %s1202_s14 = smov (!%p959_p7), 95  }
  0x72   : > { %431 = vrot.lane.b32.xlu1 %v230_v1, %s1191_s15  ;;  %429 = vrot.lane.b32.xlu0 %v233_v2, %s1191_s15 }
  0x76   : > { %433 = vrot.lane.b32.xlu1 %v234_v5, %s1191_s15  ;;  %427 = vrot.lane.b32.xlu0 %v253_v0, %s1191_s15  ;;  %s1203_s15 = smov (!%p959_p7), 87  }
  0xa4   : > { %v262_v8 = vpop.permute.xlu1 %261  ;;  %v240_v9 = vpop.permute.xlu0 %239 }
  0xa8   : > { %v288_v10 = vpop.permute.xlu1 %287  ;;  %v238_v11 = vpop.permute.xlu0 %237 }
  0xa9   : > { %v245_v12 = vsel %vm243_vm1, %v238_v11, %v240_v9 }
  0xaa   : > { %251 = vst [vmem:[#allocation2 + $0x8] sm:$0xf] %v245_v12 }
  0xac   : > { %v264_v13 = vpop.permute.xlu1 %263  ;;  %v286_v14 = vpop.permute.xlu0 %285 }
  0xad   : > { %v269_v15 = vsel %vm267_vm2, %v262_v8, %v264_v13  ;;  %v293_v16 = vsel %vm291_vm3, %v286_v14, %v288_v10 }
  0xae   : > { %275 = vst [vmem:[#allocation2 + $0x8] sm:$0xf0] %v269_v15  ;;  %299 = vst [vmem:[#allocation2 + $0x20] sm:$0xf] %v293_v16 }
  0xb0   : > { %v312_v17 = vpop.permute.xlu1 %311  ;;  %v310_v18 = vpop.permute.xlu0 %309 }
  0xb1   : > { %v317_v19 = vsel %vm315_vm4, %v310_v18, %v312_v17 }
  0xb2   : > { %323 = vst [vmem:[#allocation2 + $0x20] sm:$0xf0] %v317_v19 }
  0xb4   : > { %v260_v20 = vpop.permute.xlu1 %259  ;;  %v236_v21 = vpop.permute.xlu0 %235 }
  0xb5   : > { %v268_v22 = vsel %vm267_vm2, %v260_v20, %v262_v8  ;;  %v244_v23 = vsel %vm243_vm1, %v236_v21, %v238_v11  ;;  %v447_v28 = vld [vmem:[#allocation2 + $0x8] sm:$0xff] }
  0xb6   : > { %274 = vst [vmem:[#allocation2] sm:$0xf0] %v268_v22  ;;  %250 = vst [vmem:[#allocation2] sm:$0xf] %v244_v23 }
  0xb8   : > { %v308_v24 = vpop.permute.xlu1 %307  ;;  %v284_v25 = vpop.permute.xlu0 %283 }
  0xb9   : > { %v316_v26 = vsel %vm315_vm4, %v308_v24, %v310_v18  ;;  %v292_v27 = vsel %vm291_vm3, %v284_v25, %v286_v14  ;;  %v450_v29 = vld [vmem:[#allocation2 + $0x20] sm:$0xff] }
  0xba   : > { %322 = vst [vmem:[#allocation2 + $0x18] sm:$0xf0] %v316_v26  ;;  %298 = vst [vmem:[#allocation2 + $0x18] sm:$0xf] %v292_v27  ;;  %v985_v30 = vpack.c.bf16 %v450_v29, %v447_v28  ;;  %v445_v27 = vld [vmem:[%s1469_s1] sm:$0xff] }
  0xbc   : > { %v266_v31 = vpop.permute.xlu1 %265  ;;  %986 = vmatprep.subr.bf16.mxu0 %v985_v30  ;;  %v242_v32 = vpop.permute.xlu0 %241 }
  0xbd   : > { %v270_v33 = vsel %vm267_vm2, %v264_v13, %v266_v31  ;;  %v246_v34 = vsel %vm243_vm1, %v240_v9, %v242_v32  ;;  %v446_v39 = vld [vmem:[#allocation2] sm:$0xff]  ;;  %vm837_vm1 = vcmask (!%p959_p7), 384000   ;;  %vm790_vm2 = vcmask (!%p959_p7), 786048  }
  0xbe   : > { %276 = vst [vmem:[#allocation2 + $0x10] sm:$0xf0] %v270_v33  ;;  %252 = vst [vmem:[#allocation2 + $0x10] sm:$0xf] %v246_v34  ;;  %v634_v33 = vlaneseq (!%p959_p7) }
  0xc0   : > { %v314_v35 = vpop.permute.xlu1 %313  ;;  %v290_v36 = vpop.permute.xlu0 %289  ;;  %v635_v34 = vshrl.u32 (!%p959_p7), %v634_v33, 7 }
  0xc1   : > { %v318_v37 = vsel %vm315_vm4, %v312_v17, %v314_v35  ;;  %v294_v38 = vsel %vm291_vm3, %v288_v10, %v290_v36  ;;  %v449_v40 = vld [vmem:[#allocation2 + $0x18] sm:$0xff]  ;;  %v632_v35 = vld [vmem:[%s1470_s2] sm:$0x7] (!%p959_p7)  ;;  %vm799_vm3 = vcmask (!%p959_p7), 917248   ;;  %vm785_vm4 = vcmask (!%p959_p7), 711680  }
  0xc2   : > { %324 = vst [vmem:[#allocation2 + $0x28] sm:$0xf0] %v318_v37  ;;  %300 = vst [vmem:[#allocation2 + $0x28] sm:$0xf] %v294_v38  ;;  %v987_v41 = vpack.c.bf16 %v449_v40, %v446_v39  ;;  %v636_v37 = vsub.s32 (!%p959_p7), 0, %v635_v34  ;;  %v640_v38 = vsub.s32 (!%p959_p7), 1, %v635_v34 }
  0xc3   : > { %v644_v39 = vsub.s32 (!%p959_p7), 2, %v635_v34 }
  0xc4   : > { %v336_v42 = vpop.permute.xlu1 %335  ;;  %988 = vmatpush1.bf16.msra.mxu0 %v987_v41  ;;  %v334_v43 = vpop.permute.xlu0 %333 }
  0xc5   : > { %v341_v44 = vsel %vm339_vm5, %v334_v43, %v336_v42  ;;  %v448_v48 = vld [vmem:[#allocation2 + $0x10] sm:$0xff] }
  0xc6   : > { %347 = vst [vmem:[#allocation2 + $0x38] sm:$0xf] %v341_v44  ;;  %v641_v44 = vrot.slane (!%p959_p7), %v632_v35, %v640_v38 }
  0xc8   : > { %v360_v45 = vpop.permute.xlu1 %359  ;;  %v358_v46 = vpop.permute.xlu0 %357 }
  0xc9   : > { %v365_v47 = vsel %vm363_vm6, %v358_v46, %v360_v45  ;;  %v451_v49 = vld [vmem:[#allocation2 + $0x28] sm:$0xff] }
  0xca   : > { %371 = vst [vmem:[#allocation2 + $0x38] sm:$0xf0] %v365_v47  ;;  %v994_v50 = vpack.c.bf16 %v451_v49, %v448_v48 }
  0xcc   : > { %v384_v51 = vpop.permute.xlu1 %383  ;;  %995 = vmatpush3.bf16.msra.mxu1 %v994_v50  ;;  %v382_v52 = vpop.permute.xlu0 %381 }
  0xcd   : > { %v389_v53 = vsel %vm387_vm7, %v382_v52, %v384_v51  ;;  %996 = vmatprep.subr.bf16.mxu1 %v1185_v6 }
  0xce   : > { %395 = vst [vmem:[#allocation2 + $0x50] sm:$0xf] %v389_v53 }
  0xd0   : > { %v408_v54 = vpop.permute.xlu1 %407  ;;  %v406_v55 = vpop.permute.xlu0 %405 }
  0xd1   : > { %v413_v56 = vsel %vm411_vm8, %v406_v55, %v408_v54  ;;  %v453_v1 = vld [vmem:[#allocation2 + $0x38] sm:$0xff] }
  0xd2   : > { %419 = vst [vmem:[#allocation2 + $0x50] sm:$0xf0] %v413_v56 }
  0xd4   : > { %v356_v57 = vpop.permute.xlu1 %355  ;;  %v332_v58 = vpop.permute.xlu0 %331 }
  0xd5   : > { %v364_v59 = vsel %vm363_vm6, %v356_v57, %v358_v46  ;;  %v340_v60 = vsel %vm339_vm5, %v332_v58, %v334_v43  ;;  %v637_v43 = vrot.slane (!%p959_p7), %v632_v35, %v636_v37 }
  0xd6   : > { %370 = vst [vmem:[#allocation2 + $0x30] sm:$0xf0] %v364_v59  ;;  %346 = vst [vmem:[#allocation2 + $0x30] sm:$0xf] %v340_v60 }
  0xd8   : > { %v404_v61 = vpop.permute.xlu1 %403  ;;  %v380_v62 = vpop.permute.xlu0 %379 }
  0xd9   : > { %v412_v63 = vsel %vm411_vm8, %v404_v61, %v406_v55  ;;  %v388_v0 = vsel %vm387_vm7, %v380_v62, %v382_v52  ;;  %v456_v2 = vld [vmem:[#allocation2 + $0x50] sm:$0xff] }
  0xda   : > { %418 = vst [vmem:[#allocation2 + $0x48] sm:$0xf0] %v412_v63  ;;  %394 = vst [vmem:[#allocation2 + $0x48] sm:$0xf] %v388_v0  ;;  %v989_v3 = vpack.c.bf16 %v456_v2, %v453_v1 }
  0xdc   : > { %v362_v4 = vpop.permute.xlu1 %361  ;;  %990 = vmatprep.subr.bf16.mxu0 %v989_v3  ;;  %v338_v5 = vpop.permute.xlu0 %337 }
  0xdd   : > { %v366_v6 = vsel %vm363_vm6, %v360_v45, %v362_v4  ;;  %v342_v8 = vsel %vm339_vm5, %v336_v42, %v338_v5  ;;  %v452_v13 = vld [vmem:[#allocation2 + $0x30] sm:$0xff]  ;;  %v645_v45 = vrot.slane (!%p959_p7), %v632_v35, %v644_v39  ;;  %vm808_vm5 = vcmask (!%p959_p7), 1048448  }
  0xde   : > { %372 = vst [vmem:[#allocation2 + $0x40] sm:$0xf0] %v366_v6  ;;  %348 = vst [vmem:[#allocation2 + $0x40] sm:$0xf] %v342_v8 }
  0xe0   : > { %v410_v9 = vpop.permute.xlu1 %409  ;;  %v386_v10 = vpop.permute.xlu0 %385 }
  0xe1   : > { %v414_v11 = vsel %vm411_vm8, %v408_v54, %v410_v9  ;;  %v390_v12 = vsel %vm387_vm7, %v384_v51, %v386_v10  ;;  %v455_v14 = vld [vmem:[#allocation2 + $0x48] sm:$0xff] }
  0xe2   : > { %420 = vst [vmem:[#allocation2 + $0x58] sm:$0xf0] %v414_v11  ;;  %396 = vst [vmem:[#allocation2 + $0x58] sm:$0xf] %v390_v12  ;;  %v991_v15 = vpack.c.bf16 %v455_v14, %v452_v13 }
  0xe4   : > { %v432_v16 = vpop.permute.xlu1 %431  ;;  %992 = vmatpush1.bf16.msra.mxu0 %v991_v15  ;;  %v430_v17 = vpop.permute.xlu0 %429 }
  0xe5   : > { %v437_v18 = vsel %vm435_vm9, %v430_v17, %v432_v16  ;;  %v454_v23 = vld [vmem:[#allocation2 + $0x40] sm:$0xff] }
  0xe6   : > { %443 = vst [vmem:[#allocation2 + $0x68] sm:$0xf] %v437_v18 }
  0xe8   : > { %v434_v19 = vpop.permute.xlu1 %433  ;;  %v428_v20 = vpop.permute.xlu0 %427 }
  0xe9   : > { %v438_v21 = vsel %vm435_vm9, %v432_v16, %v434_v19  ;;  %v436_v22 = vsel %vm435_vm9, %v428_v20, %v430_v17  ;;  %v457_v24 = vld [vmem:[#allocation2 + $0x58] sm:$0xff] }
  0xea   : > { %444 = vst [vmem:[#allocation2 + $0x70] sm:$0xf] %v438_v21  ;;  %442 = vst [vmem:[#allocation2 + $0x60] sm:$0xf] %v436_v22  ;;  %v997_v25 = vpack.c.bf16 %v457_v24, %v454_v23  ;;  %v1193_v21 = vmov (!%p959_p7), 0  }
  0xeb   : > { %1080 = vset.pattern.permute.xlu0 (!%p959_p7), %v1193_v21  ;;  %1081 = vset.pattern.permute.xlu1 (!%p959_p7), %v1193_v21 }
  0xec   : > { %998 = vmatpush3.bf16.msra.mxu1 %v997_v25 }
  0xed   : > { %v459_v26 = vld [vmem:[#allocation2 + $0x68] sm:$0xf]  ;;  %980 = vmatprep.subr.mxu1 %v1190_v7 }
  0xee   : > { %953 = vmatprep.subr.msk.mxu0 %vm465_vm10, %v459_v26 }
  0xf1   : > { %v458_v28 = vld [vmem:[#allocation2 + $0x60] sm:$0xf]  ;;  %v460_v29 = vld [vmem:[#allocation2 + $0x70] sm:$0xf] }
  0xf2   : > { %954 = vmatpush1.msk.msra.mxu0 %vm465_vm10, %v458_v28  ;;  %981 = vmatpush3.msk.msra.mxu1 %vm465_vm10, %v460_v29 }
  0xf3   : > { %955 = vmatmul.mubr.msk.f32.vlgmr.msra.gmra.mrb[0].mxu0 %vm461_vm11, %v445_v27  ;;  %983 = vmatmul.mubr.msk.f32.vlgmr.msra.gmra.mrb[0].mxu1 %vm461_vm11, %v445_v27  ;;  %v693_v27 = vld [vmem:[%s1471_s3] sm:$0xff] (!%p959_p7) }
 0x1c2   : > { %625 = sbr.rel (%p959_p7) target bundleno = 1127 (0x467), region = 48 }
 0x1c6   : > { %v541_v30 = vpop.f32.mrb[0].mxu0  ;;  %v612_v31 = vpop.f32.mrb[0].mxu1 }
 0x1c7   : > { %619 = vst [vmem:[%s618_s24] sm:$0xff] %v541_v30  ;;  %621 = vst [vmem:[%s618_s24 + $0x10] sm:$0xff] %v612_v31  ;;  %v543_v32 = vpop.f32.mrb[1].mxu0  ;;  %v984_v7 = vpop.f32.mrb[1].mxu1  ;;  %v697_v30 = vld [vmem:[%s1472_s4] sm:$0xff] (!%p959_p7) }
 0x1c8   : > { %620 = vst [vmem:[%s618_s24 + $0x8] sm:$0xff] %v543_v32  ;;  %s1207_s24 = smov (!%p959_p7), 15  }
 0x1cf   : > { %v1369_v36 = vld [vmem:[#allocation3] sm:$0xff]  ;;  %v1371_v40 = vld [vmem:[#allocation3 + $0x8] sm:$0xff]  ;;  %v1373_v41 = vld [vmem:[#allocation3 + $0x10] sm:$0xff] }
 0x1d0   : > { %v1375_v42 = vld [vmem:[#allocation3 + $0x18] sm:$0xff]  ;;  %v630_v46 = vld [vmem:[#allocation3 + $0x20] sm:$0xff]  ;;  %v1377_v47 = vld [vmem:[#allocation3 + $0x28] sm:$0xff]  ;;  %v649_v48 = vmul.f32 %v637_v43, %v1369_v36  ;;  %v650_v49 = vmul.f32 %v641_v44, %v1371_v40  ;;  %v651_v50 = vmul.f32 %v645_v45, %v1373_v41 }
 0x1d1   : > { %v652_v51 = vmul.f32 %v637_v43, %v1375_v42  ;;  %v653_v52 = vmul.f32 %v641_v44, %v630_v46  ;;  %v654_v54 = vmul.f32 %v645_v45, %v1377_v47 }
 0x1d2   : > { %v655_v53 = vadd.f32 %v650_v49, %v649_v48 }
 0x1d3   : > { %v659_v55 = vadd.f32 %v653_v52, %v652_v51 }
 0x1d4   : > { %v656_v56 = vadd.f32 %v655_v53, %v651_v50 }
 0x1d5   : > { %v660_v57 = vadd.f32 %v659_v55, %v654_v54 }
 0x1d6   : > { %657 = vadd.xlane.f32.xlu0 %v656_v56 }
 0x1da   : > { %661 = vadd.xlane.f32.xlu0 %v660_v57 }
 0x263   : > { %v658_v58 = vpop.xlane.xlu0 %657 }
 0x267   : > { %v662_v59 = vpop.xlane.xlu0 %661 }
 0x268   : > { %v663_v60 = vadd.f32 %v662_v59, %v658_v58 }
 0x26a   : > { %v664_v61 = vmul.f32 0.001953125, %v663_v60 }
 0x26c   : > { %v665_v62 = vsub.f32 %v1369_v36, %v664_v61  ;;  %v666_v63 = vsub.f32 %v1371_v40, %v664_v61  ;;  %v667_v0 = vsub.f32 %v1373_v41, %v664_v61  ;;  %v668_v1 = vsub.f32 %v1375_v42, %v664_v61 }
 0x26d   : > { %v669_v2 = vsub.f32 %v630_v46, %v664_v61  ;;  %v670_v3 = vsub.f32 %v1377_v47, %v664_v61 }
 0x26e   : > { %v671_v4 = vmul.f32 %v665_v62, %v637_v43  ;;  %v672_v5 = vmul.f32 %v666_v63, %v641_v44  ;;  %v673_v6 = vmul.f32 %v667_v0, %v645_v45  ;;  %v674_v8 = vmul.f32 %v668_v1, %v637_v43 }
 0x26f   : > { %v675_v9 = vmul.f32 %v669_v2, %v641_v44  ;;  %v676_v16 = vmul.f32 %v670_v3, %v645_v45 }
 0x270   : > { %v677_v10 = vmul.f32 %v671_v4, %v671_v4  ;;  %v678_v11 = vmul.f32 %v672_v5, %v672_v5  ;;  %v680_v12 = vmul.f32 %v674_v8, %v674_v8  ;;  %v679_v14 = vmul.f32 %v673_v6, %v673_v6 }
 0x271   : > { %v681_v13 = vmul.f32 %v675_v9, %v675_v9  ;;  %v682_v19 = vmul.f32 %v676_v16, %v676_v16 }
 0x272   : > { %v683_v15 = vadd.f32 %v678_v11, %v677_v10 }
 0x273   : > { %v687_v18 = vadd.f32 %v681_v13, %v680_v12 }
 0x274   : > { %v684_v17 = vadd.f32 %v683_v15, %v679_v14 }
 0x275   : > { %v688_v20 = vadd.f32 %v687_v18, %v682_v19 }
 0x276   : > { %685 = vadd.xlane.f32.xlu1 %v684_v17 }
 0x27a   : > { %689 = vadd.xlane.f32.xlu1 %v688_v20 }
 0x303   : > { %v686_v22 = vpop.xlane.xlu1 %685 }
 0x307   : > { %v690_v23 = vpop.xlane.xlu1 %689 }
 0x308   : > { %v691_v24 = vadd.f32 %v690_v23, %v686_v22 }
 0x30a   : > { %v692_v25 = vmul.f32 0.001953125, %v691_v24 }
 0x30c   : > { %v694_v26 = vadd.f32 1e-05, %v692_v25 }
 0x30e   : > { %1082 = vrsqrt.f32 %v694_v26 }
 0x318   : > { %v1083_v28 = vpop.eup %1082 }
 0x319   : > { %v696_v29 = vmul.f32 %v1083_v28, %v693_v27 }
 0x31b   : > { %702 = vperm.xlu0 %1080, %v696_v29   ;;  %v698_v31 = vmul.f32 %v696_v29, %v664_v61 }
 0x31d   : > { %v699_v32 = vsub.f32 %v697_v30, %v698_v31 }
 0x31f   : > { %713 = vperm.xlu1 %1081, %v699_v32  }
 0x39a   : > { %v703_v7 = vpop.permute.xlu0 %702 }
 0x39b   : > { %v705_v33 = vmul.f32 %v703_v7, %v1369_v36  ;;  %v709_v34 = vmul.f32 %v703_v7, %v630_v46  ;;  %v708_v37 = vmul.f32 %v703_v7, %v1375_v42  ;;  %v707_v39 = vmul.f32 %v703_v7, %v1373_v41 }
 0x39c   : > { %v710_v50 = vmul.f32 %v703_v7, %v1377_v47  ;;  %v706_v41 = vmul.f32 %v703_v7, %v1371_v40 }
 0x39e   : > { %v714_v35 = vpop.permute.xlu1 %713 }
 0x39f   : > { %v716_v38 = vadd.f32 %v714_v35, %v705_v33  ;;  %v720_v43 = vadd.f32 %v714_v35, %v709_v34  ;;  %v719_v44 = vadd.f32 %v714_v35, %v708_v37  ;;  %v718_v48 = vadd.f32 %v714_v35, %v707_v39 }
 0x3a0   : > { %v721_v36 = vadd.f32 %v714_v35, %v710_v50  ;;  %v717_v52 = vadd.f32 %v714_v35, %v706_v41 }
 0x3a1   : > { %v722_v45 = vmax.f32 %v716_v38, 0.0  ;;  %v726_v49 = vmax.f32 %v720_v43, 0.0  ;;  %v725_v51 = vmax.f32 %v719_v44, 0.0  ;;  %v724_v46 = vmax.f32 %v718_v48, 0.0 }
 0x3a2   : > { %v727_v42 = vmax.f32 %v721_v36, 0.0  ;;  %v723_v53 = vmax.f32 %v717_v52, 0.0 }
 0x3a3   : > { %730 = vrot.lane.b32.xlu1 %v722_v45, %s1194_s9  ;;  %821 = vrot.lane.b32.xlu0 %v726_v49, %s1195_s11 }
 0x3a7   : > { %732 = vrot.lane.b32.xlu1 %v725_v51, %s1194_s9  ;;  %831 = vrot.lane.b32.xlu0 %v724_v46, %s1196_s8 }
 0x3ab   : > { %739 = vrot.lane.b32.xlu1 %v722_v45, %s1197_s21  ;;  %835 = vrot.lane.b32.xlu0 %v727_v42, %s1196_s8 }
 0x3af   : > { %741 = vrot.lane.b32.xlu1 %v725_v51, %s1197_s21  ;;  %750 = vrot.lane.b32.xlu0 %v725_v51, %s1198_s10 }
 0x3b3   : > { %811 = vrot.lane.b32.xlu1 %v723_v53, %s1199_s27  ;;  %759 = vrot.lane.b32.xlu0 %v725_v51, %s1200_s12 }
 0x3b7   : > { %813 = vrot.lane.b32.xlu1 %v726_v49, %s1199_s27  ;;  %846 = vrot.lane.b32.xlu0 %v727_v42, %s1201_s13 }
 0x3bb   : > { %819 = vrot.lane.b32.xlu1 %v723_v53, %s1195_s11  ;;  %768 = vrot.lane.b32.xlu0 %v725_v51, %s1202_s14 }
 0x3bf   : > { %829 = vrot.lane.b32.xlu1 %v723_v53, %s1196_s8  ;;  %779 = vrot.lane.b32.xlu0 %v723_v53, %s1203_s15 }
 0x3c3   : > { %833 = vrot.lane.b32.xlu1 %v726_v49, %s1196_s8  ;;  %783 = vrot.lane.b32.xlu0 %v726_v49, %s1203_s15 }
 0x3c7   : > { %748 = vrot.lane.b32.xlu1 %v722_v45, %s1198_s10  ;;  %854 = vrot.lane.b32.xlu0 %v727_v42, %s1204_s16 }
 0x3cb   : > { %757 = vrot.lane.b32.xlu1 %v722_v45, %s1200_s12  ;;  %862 = vrot.lane.b32.xlu0 %v727_v42, %s1205_s17 }
 0x3cf   : > { %844 = vrot.lane.b32.xlu1 %v724_v46, %s1201_s13  ;;  %795 = vrot.lane.b32.xlu0 %v726_v49, %s1206_s18 }
 0x3d3   : > { %766 = vrot.lane.b32.xlu1 %v722_v45, %s1202_s14  ;;  %870 = vrot.lane.b32.xlu0 %v727_v42, %s1207_s24 }
 0x3d7   : > { %777 = vrot.lane.b32.xlu1 %v722_v45, %s1203_s15  ;;  %804 = vrot.lane.b32.xlu0 %v726_v49, %s1208_s25 }
 0x3db   : > { %781 = vrot.lane.b32.xlu1 %v725_v51, %s1203_s15  ;;  %878 = vrot.lane.b32.xlu0 %v727_v42, %s1209_s28 }
 0x3df   : > { %852 = vrot.lane.b32.xlu1 %v724_v46, %s1204_s16 }
 0x3e3   : > { %860 = vrot.lane.b32.xlu1 %v724_v46, %s1205_s17 }
 0x3e7   : > { %793 = vrot.lane.b32.xlu1 %v723_v53, %s1206_s18 }
 0x3eb   : > { %868 = vrot.lane.b32.xlu1 %v724_v46, %s1207_s24 }
 0x3ef   : > { %802 = vrot.lane.b32.xlu1 %v723_v53, %s1208_s25 }
 0x3f3   : > { %876 = vrot.lane.b32.xlu1 %v724_v46, %s1209_s28 }
 0x415   : > { %v731_v40 = vpop.permute.xlu1 %730  ;;  %v822_v47 = vpop.permute.xlu0 %821 }
 0x416   : > { %737 = vst.msk [vmem:[#allocation7] sm:$0xff] %vm736_vm12, %v731_v40 }
 0x419   : > { %v733_v54 = vpop.permute.xlu1 %732  ;;  %v832_v55 = vpop.permute.xlu0 %831 }
 0x41a   : > { %738 = vst.msk [vmem:[#allocation7 + $0x10] sm:$0xff] %vm736_vm12, %v733_v54 }
 0x41d   : > { %v740_v56 = vpop.permute.xlu1 %739  ;;  %v836_v57 = vpop.permute.xlu0 %835 }
 0x41e   : > { %746 = vst.msk [vmem:[#allocation7] sm:$0xff] %vm745_vm13, %v740_v56 }
 0x421   : > { %v742_v58 = vpop.permute.xlu1 %741  ;;  %v751_v59 = vpop.permute.xlu0 %750 }
 0x422   : > { %747 = vst.msk [vmem:[#allocation7 + $0x10] sm:$0xff] %vm745_vm13, %v742_v58 }
 0x423   : > { %756 = vst.msk [vmem:[#allocation7 + $0x10] sm:$0xff] %vm754_vm14, %v751_v59 }
 0x425   : > { %v812_v60 = vpop.permute.xlu1 %811  ;;  %v760_v61 = vpop.permute.xlu0 %759 }
 0x426   : > { %817 = vst.msk [vmem:[#allocation7 + $0x8] sm:$0xff] %vm736_vm12, %v812_v60 }
 0x427   : > { %765 = vst.msk [vmem:[#allocation7 + $0x10] sm:$0xff] %vm763_vm15, %v760_v61 }
 0x429   : > { %v814_v62 = vpop.permute.xlu1 %813  ;;  %v847_v63 = vpop.permute.xlu0 %846 }
 0x42a   : > { %818 = vst.msk [vmem:[#allocation7 + $0x18] sm:$0xff] %vm736_vm12, %v814_v62 }
 0x42b   : > { %826 = vst.msk [vmem:[#allocation7 + $0x18] sm:$0xff] %vm745_vm13, %v822_v47 }
 0x42d   : > { %v820_v0 = vpop.permute.xlu1 %819  ;;  %v769_v1 = vpop.permute.xlu0 %768 }
 0x42e   : > { %825 = vst.msk [vmem:[#allocation7 + $0x8] sm:$0xff] %vm745_vm13, %v820_v0 }
 0x42f   : > { %774 = vst.msk [vmem:[#allocation7 + $0x10] sm:$0xff] %vm772_vm0, %v769_v1 }
 0x431   : > { %v830_v2 = vpop.permute.xlu1 %829  ;;  %v780_v3 = vpop.permute.xlu0 %779 }
 0x432   : > { %v838_v4 = vsel %vm837_vm1, %v830_v2, %v832_v55 }
 0x433   : > { %842 = vst.msk [vmem:[#allocation7 + $0x8] sm:$0xff] %vm754_vm14, %v838_v4 }
 0x435   : > { %v834_v5 = vpop.permute.xlu1 %833  ;;  %v784_v6 = vpop.permute.xlu0 %783 }
 0x436   : > { %v839_v8 = vsel %vm837_vm1, %v834_v5, %v836_v57 }
 0x437   : > { %843 = vst.msk [vmem:[#allocation7 + $0x18] sm:$0xff] %vm754_vm14, %v839_v8 }
 0x438   : > { %851 = vst.msk [vmem:[#allocation7 + $0x18] sm:$0xff] %vm763_vm15, %v847_v63 }
 0x439   : > { %v749_v9 = vpop.permute.xlu1 %748  ;;  %v855_v10 = vpop.permute.xlu0 %854 }
 0x43a   : > { %755 = vst.msk [vmem:[#allocation7] sm:$0xff] %vm754_vm14, %v749_v9 }
 0x43b   : > { %859 = vst.msk [vmem:[#allocation7 + $0x18] sm:$0xff] %vm772_vm0, %v855_v10 }
 0x43d   : > { %v758_v11 = vpop.permute.xlu1 %757  ;;  %v863_v12 = vpop.permute.xlu0 %862 }
 0x43e   : > { %764 = vst.msk [vmem:[#allocation7] sm:$0xff] %vm763_vm15, %v758_v11 }
 0x43f   : > { %867 = vst.msk [vmem:[#allocation7 + $0x18] sm:$0xff] %vm790_vm2, %v863_v12 }
 0x441   : > { %v845_v13 = vpop.permute.xlu1 %844  ;;  %v796_v14 = vpop.permute.xlu0 %795 }
 0x442   : > { %850 = vst.msk [vmem:[#allocation7 + $0x8] sm:$0xff] %vm763_vm15, %v845_v13 }
 0x445   : > { %v767_v15 = vpop.permute.xlu1 %766  ;;  %v871_v16 = vpop.permute.xlu0 %870 }
 0x446   : > { %773 = vst.msk [vmem:[#allocation7] sm:$0xff] %vm772_vm0, %v767_v15 }
 0x447   : > { %875 = vst.msk [vmem:[#allocation7 + $0x18] sm:$0xff] %vm799_vm3, %v871_v16 }
 0x449   : > { %v778_v17 = vpop.permute.xlu1 %777  ;;  %v805_v18 = vpop.permute.xlu0 %804 }
 0x44a   : > { %v786_v19 = vsel %vm785_vm4, %v778_v17, %v780_v3 }
 0x44b   : > { %791 = vst.msk [vmem:[#allocation7] sm:$0xff] %vm790_vm2, %v786_v19 }
 0x44d   : > { %v782_v20 = vpop.permute.xlu1 %781  ;;  %v879_v21 = vpop.permute.xlu0 %878 }
 0x44e   : > { %v787_v22 = vsel %vm785_vm4, %v782_v20, %v784_v6  ;;  %883 = vst.msk [vmem:[#allocation7 + $0x18] sm:$0xff] %vm808_vm5, %v879_v21 }
 0x44f   : > { %792 = vst.msk [vmem:[#allocation7 + $0x10] sm:$0xff] %vm790_vm2, %v787_v22 }
 0x450   : > { %801 = vst.msk [vmem:[#allocation7 + $0x10] sm:$0xff] %vm799_vm3, %v796_v14 }
 0x451   : > { %810 = vst.msk [vmem:[#allocation7 + $0x10] sm:$0xff] %vm808_vm5, %v805_v18  ;;  %v853_v23 = vpop.permute.xlu1 %852 }
 0x452   : > { %858 = vst.msk [vmem:[#allocation7 + $0x8] sm:$0xff] %vm772_vm0, %v853_v23 }
 0x455   : > { %v861_v24 = vpop.permute.xlu1 %860 }
 0x456   : > { %866 = vst.msk [vmem:[#allocation7 + $0x8] sm:$0xff] %vm790_vm2, %v861_v24 }
 0x459   : > { %v794_v25 = vpop.permute.xlu1 %793 }
 0x45a   : > { %800 = vst.msk [vmem:[#allocation7] sm:$0xff] %vm799_vm3, %v794_v25 }
 0x45d   : > { %v869_v26 = vpop.permute.xlu1 %868 }
 0x45e   : > { %874 = vst.msk [vmem:[#allocation7 + $0x8] sm:$0xff] %vm799_vm3, %v869_v26 }
 0x461   : > { %v803_v27 = vpop.permute.xlu1 %802 }
 0x462   : > { %809 = vst.msk [vmem:[#allocation7] sm:$0xff] %vm808_vm5, %v803_v27 }
 0x465   : > { %v877_v28 = vpop.permute.xlu1 %876 }
 0x466   : > { %882 = vst.msk [vmem:[#allocation7 + $0x8] sm:$0xff] %vm808_vm5, %v877_v28 }
 0x467 PF: > { %p1010_p8 = scmp.eq.s32.totalorder %s1262_s22, 1  ;;  %s1210_s29 = smov [#allocation7]  }
 0x468   : > { %s890_s30 = sshll.u32 %s1210_s29, 4  ;;  %s891_s30 = int_to_ptr.vmem [resolvable:$true] %s890_s30 }
 0x469   : > { %s1114_s6 = scalar_lea.vmem %s891_s30, 512  ;;  %p1121_p6 = scmp.lt.s32.totalorder %s891_s30, %s891_s30 }
 0x46a   : > { %p1115_p9 = scmp.ne.s32.totalorder %s891_s30, %s1114_s6  ;;  %p1122_p11 = scmp.lt.s32.totalorder %s1114_s6, %s1114_s6 }
 0x46c   : > { %p1116_p10 = pnand %p1115_p9, %p1010_p8  ;;  %p1123_p13 = por %p1122_p11, %p1121_p6 }
 0x46e   : > { %p1117_p5 = pneg %p1116_p10 }
 0x470   : > { %p1124_p1 = pnand %p1123_p13, %p1117_p5 }
 0x472   : > { %1127 = shalt.err (!%p1124_p1)
}
 0x473   : > { %s1128_s11 = scalar_lea.hbm %s1473_s5, 512 }
 0x474   : > { %p1129_p2 = scmp.ne.s32.totalorder %s1473_s5, %s1128_s11  ;;  %p1134_p4 = scmp.lt.u32.totalorder %s1128_s11, %s1473_s5 }
 0x476   : > { %p1130_p3 = pnand %p1129_p2, %p1010_p8 }
 0x478   : > { %p1131_p0 = pneg %p1130_p3 }
 0x47a   : > { %p1136_p12 = pnand %p1134_p4, %p1131_p0 }
 0x47c   : > { %1139 = shalt.err (!%p1136_p12)
}
 0x47d   : > { %s1211_s12 = smov 256   ;;  %s1212_s13 = smov 16  }
 0x47e   : > { %1002 = dma.vmem_to_hbm [thread:$0]  (%p1010_p8), %s891_s30, 512, %s1473_s5, [#allocation6], %s1211_s12, %s1211_s12, %s1212_s13  }
 0x47f   : > { %1161 = dma.done.wait (%p1010_p8), [#allocation6], 512  }
 0x480   : > { %1163 = vsyncadd (%p1010_p8), [#allocation6], 4294966784 }
 0x481 PF: > { %p16_p7 = scmp.ge.s32.totalorder %s1265_s23, 4   ;;  %s1478_s18 = smov %s1170_s19 }
 0x482   : > { %s1479_s19 = smov %s1174_s20  ;;  %s1480_s20 = smov %s1275_s26 }
 0x483   : > { %s1481_s21 = smov %s1265_s23  ;;  %18 = sbr.rel (!%p16_p7) target bundleno = 4 (0x4), region = 82 }
 0x48a   :  { %906 = vsyncpa [#allocation5], 1 }
 0x48b   :  { %908 = vsyncpa [#allocation5 + $0x1], 1 }
 0x48c   :  { %909 = vsyncpa [#allocation6], 1 }
 0x48d   :  { %911 = vsyncpa [#allocation6 + $0x1], 1 }

</bundles_post_ra>
